<compile_context>
chip_gen: v6e
topology: v6e:2x2x1
jax: 0.10.0
libtpu: 0.0.40
codegen_flags: <defaults>
</compile_context>

<pallas_src>
import functools

import jax
import jax.numpy as jnp
from jax.experimental import pallas as pl
from jax.experimental.pallas import tpu as pltpu

EPS = 1e-5
LANE = 128
SUBLANE = 8


def _round_up(n, m):
    return ((n + m - 1) // m) * m


# ---------------------------------------------------------------------------
# Single fused kernel: entire network forward (one pallas_call, 3 input DMAs)
# ---------------------------------------------------------------------------
def fused_dnn_kernel(nb_layers, rb0, x_ref, w_ref, v_ref, o_ref):
    """Whole DNN forward on VMEM-resident data.

    x_ref : (B, rb0)                      input, lane-padded to rb0 columns
    w_ref : (rb0 + (nb_layers-1)*W, W)    weights stacked along sublanes,
                                          pre-transposed (Din, Dout), zero padded
    v_ref : (3*(nb_layers-1) + 1, W)      rows: [b, gamma, beta] per hidden layer,
                                          then the final layer bias
    o_ref : (B, W)                        lane-padded output (W multiple of 128)
    """
    nb_hidden = nb_layers - 1
    W = o_ref.shape[1]
    inv_b = jnp.float32(1.0 / x_ref.shape[0])

    h = x_ref[...]                                   # (B, rb0)
    row = 0
    for l in range(nb_hidden):
        din = rb0 if l == 0 else W
        w = w_ref[row:row + din, :]                  # static, sublane-aligned view
        row += din
        b = v_ref[3 * l:3 * l + 1, :]                # (1, W)
        gamma = v_ref[3 * l + 1:3 * l + 2, :]        # (1, W)
        beta = v_ref[3 * l + 2:3 * l + 3, :]         # (1, W)

        # Linear (MXU) + bias, ReLU
        h = jnp.dot(h, w, preferred_element_type=jnp.float32) + b
        h = jnp.maximum(h, 0.0)

        # BatchNorm1d, training-mode batch stats (biased variance), single pass:
        # sum(h) and sum(h*h) are independent reductions (overlap in the XLU),
        # then the whole normalization collapses to one FMA on the (B, W) tile.
        mean = jnp.sum(h, axis=0, keepdims=True) * inv_b
        ex2 = jnp.sum(h * h, axis=0, keepdims=True) * inv_b
        var = ex2 - mean * mean
        s = gamma * jax.lax.rsqrt(var + EPS)         # (1, W)
        t = beta - mean * s                          # (1, W)
        h = h * s + t

    # Final plain linear; weight/bias are lane-padded so the output store is
    # a lane-dense (unmasked) vst.
    w_last = w_ref[row:row + W, :]
    b_last = v_ref[3 * nb_hidden:3 * nb_hidden + 1, :]
    o_ref[...] = jnp.dot(h, w_last, preferred_element_type=jnp.float32) + b_last


# ---------------------------------------------------------------------------
# Wrapper: one pallas_call, whole-array VMEM blocks, no grid
# ---------------------------------------------------------------------------
def _vmem_spec():
    return pl.BlockSpec(memory_space=pltpu.MemorySpace.VMEM)


@functools.partial(jax.jit, static_argnames=("nb_layers", "input_dim", "output_dim"))
def dnn_forward(x, w_pack, v_pack, *, nb_layers, input_dim, output_dim):
    B = x.shape[0]
    W = w_pack.shape[1]
    rb0 = _round_up(input_dim, SUBLANE)

    # Zero-pad the input columns up to the sublane-aligned width used by the
    # packed first-layer weight block (fused into the same XLA program).
    if x.shape[1] != rb0:
        x = jnp.pad(x, ((0, 0), (0, rb0 - x.shape[1])))

    kernel = functools.partial(fused_dnn_kernel, nb_layers, rb0)
    out_padded = pl.pallas_call(
        kernel,
        out_shape=jax.ShapeDtypeStruct((B, W), jnp.float32),
        in_specs=[_vmem_spec()] * 3,
        out_specs=_vmem_spec(),
    )(x, w_pack, v_pack)
    # Lane-padded kernel output -> module's output_dim (fused inside the jit).
    return out_padded[:, :output_dim]


# ---------------------------------------------------------------------------
# Parameter construction: mirrors nn.Linear default init (U(-1/sqrt(fan_in), +)),
# weights stored pre-transposed (Din, Dout), everything zero-padded into two
# packed slabs (w_pack, v_pack). Also returns unpacked params for the reference.
# ---------------------------------------------------------------------------
def init_dnn_params(key, nb_layers, nb_units, input_dim=18, output_dim=1):
    assert nb_layers > 1
    W = _round_up(max(nb_units, output_dim), LANE)
    rb0 = _round_up(input_dim, SUBLANE)

    w_blocks, v_rows, ref_params = [], [], []
    for i in range(nb_layers):
        d_in = input_dim if i == 0 else nb_units
        d_out = output_dim if i == nb_layers - 1 else nb_units
        key, kw, kb = jax.random.split(key, 3)
        bound = 1.0 / float(d_in ** 0.5)
        w = jax.random.uniform(kw, (d_in, d_out), jnp.float32, -bound, bound)
        b = jax.random.uniform(kb, (d_out,), jnp.float32, -bound, bound)

        rows = rb0 if i == 0 else W
        w_blocks.append(jnp.zeros((rows, W), jnp.float32).at[:d_in, :d_out].set(w))

        b_row = jnp.zeros((1, W), jnp.float32).at[0, :d_out].set(b)
        if i == nb_layers - 1:
            v_rows.append(b_row)
            ref_params.append({"w": w, "b": b})
        else:
            gamma = jnp.ones((d_out,), jnp.float32)
            beta = jnp.zeros((d_out,), jnp.float32)
            v_rows.append(b_row)
            v_rows.append(jnp.zeros((1, W), jnp.float32).at[0, :d_out].set(gamma))
            v_rows.append(jnp.zeros((1, W), jnp.float32).at[0, :d_out].set(beta))
            ref_params.append({"w": w, "b": b, "gamma": gamma, "beta": beta})

    w_pack = jnp.concatenate(w_blocks, axis=0)   # (rb0 + (nb_layers-1)*W, W)
    v_pack = jnp.concatenate(v_rows, axis=0)     # (3*(nb_layers-1) + 1, W)
    return w_pack, v_pack, ref_params


# ---------------------------------------------------------------------------
# Pure-JAX reference (unpadded, centered two-pass BN), for correctness checking
# ---------------------------------------------------------------------------
def dnn_forward_ref(x, ref_params):
    n = len(ref_params)
    for i, p in enumerate(ref_params):
        if i == n - 1:
            x = x @ p["w"] + p["b"]
        else:
            h = jnp.maximum(x @ p["w"] + p["b"], 0.0)
            mean = jnp.mean(h, axis=0, keepdims=True)
            var = jnp.mean((h - mean) ** 2, axis=0, keepdims=True)
            x = p["gamma"] * (h - mean) / jnp.sqrt(var + EPS) + p["beta"]
    return x


if __name__ == "__main__":
    # DNN(nb_layers=3, nb_units=32, input_dim=18, output_dim=1), batch = 8.
    nb_layers, nb_units, input_dim, output_dim, batch = 3, 32, 18, 1, 8

    key = jax.random.PRNGKey(0)
    kx, kp = jax.random.split(key)
    x = jax.random.normal(kx, (batch, input_dim), jnp.float32)
    w_pack, v_pack, ref_params = init_dnn_params(
        kp, nb_layers, nb_units, input_dim, output_dim)

    out = dnn_forward(x, w_pack, v_pack,
                      nb_layers=nb_layers, input_dim=input_dim, output_dim=output_dim)
    out = jax.block_until_ready(out)

    ref = dnn_forward_ref(x, ref_params)
    assert out.shape == (batch, output_dim), out.shape
    assert jnp.allclose(out, ref, atol=5e-4, rtol=5e-4), (out, ref)

    print("KERNEL_OK")
</pallas_src>

<mosaic_0001>
module attributes {stable_mosaic.version = 11 : i64} {
  func.func @fused_dnn_kernel(%arg0: memref<8x24xf32, #tpu.memory_space<vmem>>, %arg1: memref<280x128xf32, #tpu.memory_space<vmem>>, %arg2: memref<7x128xf32, #tpu.memory_space<vmem>>, %arg3: memref<8x128xf32, #tpu.memory_space<vmem>>) attributes {dimension_semantics = [], scalar_prefetch = 0 : i64, scratch_operands = 0 : i64, tpu.core_type = #tpu.core_type<tc>} {
    %c0 = arith.constant 0 : index
    %c0_0 = arith.constant 0 : index
    %0 = vector.load %arg0[%c0, %c0_0] : memref<8x24xf32, #tpu.memory_space<vmem>>, vector<8x24xf32>
    %c0_1 = arith.constant 0 : index
    %c0_2 = arith.constant 0 : index
    %1 = vector.load %arg1[%c0_1, %c0_2] : memref<280x128xf32, #tpu.memory_space<vmem>>, vector<24x128xf32>
    %c0_3 = arith.constant 0 : index
    %c0_4 = arith.constant 0 : index
    %2 = vector.load %arg2[%c0_3, %c0_4] : memref<7x128xf32, #tpu.memory_space<vmem>>, vector<1x128xf32>
    %c1 = arith.constant 1 : index
    %c0_5 = arith.constant 0 : index
    %3 = vector.load %arg2[%c1, %c0_5] : memref<7x128xf32, #tpu.memory_space<vmem>>, vector<1x128xf32>
    %c2 = arith.constant 2 : index
    %c0_6 = arith.constant 0 : index
    %4 = vector.load %arg2[%c2, %c0_6] : memref<7x128xf32, #tpu.memory_space<vmem>>, vector<1x128xf32>
    %cst = arith.constant dense<0.000000e+00> : vector<8x128xf32>
    %5 = tpu.matmul %0, %1, %cst {dimension_numbers = #tpu.dot_dimension_numbers<[1], [0], [0], [1], [0, 0, 1, 1], [], []>} : vector<8x24xf32>, vector<24x128xf32>, vector<8x128xf32> -> vector<8x128xf32>
    %6 = vector.broadcast %2 : vector<1x128xf32> to vector<8x128xf32>
    %7 = arith.addf %5, %6 : vector<8x128xf32>
    %cst_7 = arith.constant 0.000000e+00 : f32
    %8 = vector.broadcast %cst_7 : f32 to vector<8x128xf32>
    %9 = arith.maximumf %7, %8 : vector<8x128xf32>
    %cst_8 = arith.constant dense<0.000000e+00> : vector<128xf32>
    %10 = vector.multi_reduction <add>, %9, %cst_8 [0] : vector<8x128xf32> to vector<128xf32>
    %11 = vector.shape_cast %10 : vector<128xf32> to vector<1x128xf32>
    %cst_9 = arith.constant 1.250000e-01 : f32
    %12 = vector.broadcast %cst_9 : f32 to vector<1x128xf32>
    %13 = arith.mulf %11, %12 : vector<1x128xf32>
    %14 = arith.mulf %9, %9 : vector<8x128xf32>
    %cst_10 = arith.constant dense<0.000000e+00> : vector<128xf32>
    %15 = vector.multi_reduction <add>, %14, %cst_10 [0] : vector<8x128xf32> to vector<128xf32>
    %16 = vector.shape_cast %15 : vector<128xf32> to vector<1x128xf32>
    %cst_11 = arith.constant 1.250000e-01 : f32
    %17 = vector.broadcast %cst_11 : f32 to vector<1x128xf32>
    %18 = arith.mulf %16, %17 : vector<1x128xf32>
    %19 = arith.mulf %13, %13 : vector<1x128xf32>
    %20 = arith.subf %18, %19 : vector<1x128xf32>
    %cst_12 = arith.constant 9.99999974E-6 : f32
    %21 = vector.broadcast %cst_12 : f32 to vector<1x128xf32>
    %22 = arith.addf %20, %21 : vector<1x128xf32>
    %23 = math.rsqrt %22 : vector<1x128xf32>
    %24 = arith.mulf %3, %23 : vector<1x128xf32>
    %25 = arith.mulf %13, %24 : vector<1x128xf32>
    %26 = arith.subf %4, %25 : vector<1x128xf32>
    %27 = vector.broadcast %24 : vector<1x128xf32> to vector<8x128xf32>
    %28 = arith.mulf %9, %27 : vector<8x128xf32>
    %29 = vector.broadcast %26 : vector<1x128xf32> to vector<8x128xf32>
    %30 = arith.addf %28, %29 : vector<8x128xf32>
    %c24 = arith.constant 24 : index
    %c0_13 = arith.constant 0 : index
    %31 = vector.load %arg1[%c24, %c0_13] : memref<280x128xf32, #tpu.memory_space<vmem>>, vector<128x128xf32>
    %c3 = arith.constant 3 : index
    %c0_14 = arith.constant 0 : index
    %32 = vector.load %arg2[%c3, %c0_14] : memref<7x128xf32, #tpu.memory_space<vmem>>, vector<1x128xf32>
    %c4 = arith.constant 4 : index
    %c0_15 = arith.constant 0 : index
    %33 = vector.load %arg2[%c4, %c0_15] : memref<7x128xf32, #tpu.memory_space<vmem>>, vector<1x128xf32>
    %c5 = arith.constant 5 : index
    %c0_16 = arith.constant 0 : index
    %34 = vector.load %arg2[%c5, %c0_16] : memref<7x128xf32, #tpu.memory_space<vmem>>, vector<1x128xf32>
    %cst_17 = arith.constant dense<0.000000e+00> : vector<8x128xf32>
    %35 = tpu.matmul %30, %31, %cst_17 {dimension_numbers = #tpu.dot_dimension_numbers<[1], [0], [0], [1], [0, 0, 1, 1], [], []>} : vector<8x128xf32>, vector<128x128xf32>, vector<8x128xf32> -> vector<8x128xf32>
    %36 = vector.broadcast %32 : vector<1x128xf32> to vector<8x128xf32>
    %37 = arith.addf %35, %36 : vector<8x128xf32>
    %cst_18 = arith.constant 0.000000e+00 : f32
    %38 = vector.broadcast %cst_18 : f32 to vector<8x128xf32>
    %39 = arith.maximumf %37, %38 : vector<8x128xf32>
    %cst_19 = arith.constant dense<0.000000e+00> : vector<128xf32>
    %40 = vector.multi_reduction <add>, %39, %cst_19 [0] : vector<8x128xf32> to vector<128xf32>
    %41 = vector.shape_cast %40 : vector<128xf32> to vector<1x128xf32>
    %cst_20 = arith.constant 1.250000e-01 : f32
    %42 = vector.broadcast %cst_20 : f32 to vector<1x128xf32>
    %43 = arith.mulf %41, %42 : vector<1x128xf32>
    %44 = arith.mulf %39, %39 : vector<8x128xf32>
    %cst_21 = arith.constant dense<0.000000e+00> : vector<128xf32>
    %45 = vector.multi_reduction <add>, %44, %cst_21 [0] : vector<8x128xf32> to vector<128xf32>
    %46 = vector.shape_cast %45 : vector<128xf32> to vector<1x128xf32>
    %cst_22 = arith.constant 1.250000e-01 : f32
    %47 = vector.broadcast %cst_22 : f32 to vector<1x128xf32>
    %48 = arith.mulf %46, %47 : vector<1x128xf32>
    %49 = arith.mulf %43, %43 : vector<1x128xf32>
    %50 = arith.subf %48, %49 : vector<1x128xf32>
    %cst_23 = arith.constant 9.99999974E-6 : f32
    %51 = vector.broadcast %cst_23 : f32 to vector<1x128xf32>
    %52 = arith.addf %50, %51 : vector<1x128xf32>
    %53 = math.rsqrt %52 : vector<1x128xf32>
    %54 = arith.mulf %33, %53 : vector<1x128xf32>
    %55 = arith.mulf %43, %54 : vector<1x128xf32>
    %56 = arith.subf %34, %55 : vector<1x128xf32>
    %57 = vector.broadcast %54 : vector<1x128xf32> to vector<8x128xf32>
    %58 = arith.mulf %39, %57 : vector<8x128xf32>
    %59 = vector.broadcast %56 : vector<1x128xf32> to vector<8x128xf32>
    %60 = arith.addf %58, %59 : vector<8x128xf32>
    %c152 = arith.constant 152 : index
    %c0_24 = arith.constant 0 : index
    %61 = vector.load %arg1[%c152, %c0_24] : memref<280x128xf32, #tpu.memory_space<vmem>>, vector<128x128xf32>
    %c6 = arith.constant 6 : index
    %c0_25 = arith.constant 0 : index
    %62 = vector.load %arg2[%c6, %c0_25] : memref<7x128xf32, #tpu.memory_space<vmem>>, vector<1x128xf32>
    %cst_26 = arith.constant dense<0.000000e+00> : vector<8x128xf32>
    %63 = tpu.matmul %60, %61, %cst_26 {dimension_numbers = #tpu.dot_dimension_numbers<[1], [0], [0], [1], [0, 0, 1, 1], [], []>} : vector<8x128xf32>, vector<128x128xf32>, vector<8x128xf32> -> vector<8x128xf32>
    %64 = vector.broadcast %62 : vector<1x128xf32> to vector<8x128xf32>
    %65 = arith.addf %63, %64 : vector<8x128xf32>
    %c0_27 = arith.constant 0 : index
    %c0_28 = arith.constant 0 : index
    %66 = vector.load %arg3[%c0_27, %c0_28] : memref<8x128xf32, #tpu.memory_space<vmem>>, vector<8x128xf32>
    tpu.vector_store %arg3[%c0_27, %c0_28], %65 {strides = array<i32>} : memref<8x128xf32, #tpu.memory_space<vmem>>, vector<8x128xf32>,
    return
  }
}

</mosaic_0001>

<bundles_post_ra>
// kernel: dnn_forward.1
= control target key start
LH: loop header
LB: loop body
LE: loop exit
PB: predicated region body
PF: predicated region fallthrough
CT: control target
= control target key end

     0   :  { %8 = vsyncpa [#allocation3], 0  ;;  %s521_s12 = smov [#allocation2]   ;;  %s623_s0 = inlined_call_operand.vmem [shape: f32[8,24], index: 0, kind: input, shape index: {}]   ;;  %s624_s1 = inlined_call_operand.hbm [shape: f32[280,128], index: 1, kind: input, shape index: {}]   ;;  %s625_s2 = inlined_call_operand.vmem [shape: f32[7,128], index: 2, kind: input, shape index: {}]   ;;  %s626_s3 = inlined_call_operand.vmem [shape: f32[8,128], index: 3, kind: output, shape index: {}]  }
   0x1   :  { %s16_s13 = sshll.u32 %s521_s12, 4  ;;  %s17_s13 = int_to_ptr.vmem [resolvable:$true] %s16_s13 }
   0x2   :  { %s507_s14 = scalar_lea.vmem %s17_s13, 4480  ;;  %p512_p1 = scmp.lt.s32.totalorder %s17_s13, %s17_s13 }
   0x3   :  { %p508_p0 = scmp.ne.s32.totalorder %s17_s13, %s507_s14  ;;  %p513_p2 = scmp.lt.s32.totalorder %s507_s14, %s507_s14 }
   0x5   :  { %p514_p3 = por %p513_p2, %p512_p1 }
   0x7   :  { %p515_p4 = pnand %p514_p3, %p508_p0 }
   0x9   :  { %518 = shalt.err (!%p515_p4)
}
   0xa   :  { %s522_s15 = smov 128   ;;  %s523_s16 = smov 8  }
   0xb   :  { %22 = dma.hbm_to_vmem [thread:$0]  %s624_s1, 4480, %s17_s13, [#allocation3], %s522_s15, %s522_s15, %s523_s16  }
   0xc   :  { %519 = dma.done.wait [#allocation3], 4480  }
   0xd   :  { %520 = vsyncadd [#allocation3], 4294962816  ;;  %v524_v0 = vmov 0.0   ;;  %vm525_vm0 = vmmov 0   ;;  %v31_v1 = vld [vmem:[#allocation2 + $0x10] sm:$0xff]  ;;  %v30_v2 = vld [vmem:[#allocation2 + $0x8] sm:$0xff]  ;;  %v136_v44 = vlaneseq }
   0xe   :  { %411 = vmatprep.subr.mxu0 %v524_v0  ;;  %417 = vmatprep.mubr.msk.f32.mxu0 %vm525_vm0, %v524_v0  ;;  %v29_v3 = vld [vmem:[#allocation2] sm:$0xff]  ;;  %vm39_vm1 = vcmask 195584   ;;  %v161_v5 = vld [vmem:[#allocation2 + $0x90] sm:$0xff]  ;;  %v160_v6 = vld [vmem:[#allocation2 + $0x88] sm:$0xff] }
   0xf   :  { %420 = vmatprep.subr.mxu1 %v524_v0  ;;  %452 = vmatprep.mubr.msk.f32.mxu1 %vm525_vm0, %v524_v0  ;;  %v28_v4 = vld [vmem:[%s623_s0] sm:$0xff]  ;;  %v158_v8 = vld [vmem:[#allocation2 + $0x78] sm:$0xff]  ;;  %v157_v9 = vld [vmem:[#allocation2 + $0x70] sm:$0xff]  ;;  %v137_v45 = vshrl.u32 %v136_v44, 7 }
  0x10   :  { %412 = vmatpush3.msra.mxu0 %v31_v1  ;;  %421 = vmatpush3.msra.mxu1 %v161_v5  ;;  %v159_v7 = vld [vmem:[#allocation2 + $0x80] sm:$0xff]  ;;  %v156_v10 = vld [vmem:[#allocation2 + $0x68] sm:$0xff]  ;;  %v154_v12 = vld [vmem:[#allocation2 + $0x58] sm:$0xff] }
  0x11   :  { %413 = vmatprep.subr.mxu0 %v524_v0  ;;  %422 = vmatprep.subr.mxu1 %v524_v0  ;;  %v155_v11 = vld [vmem:[#allocation2 + $0x60] sm:$0xff]  ;;  %v153_v13 = vld [vmem:[#allocation2 + $0x50] sm:$0xff]  ;;  %v152_v14 = vld [vmem:[#allocation2 + $0x48] sm:$0xff]  ;;  %v584_v47 = vsub.s32 0, %v137_v45 }
  0x12   :  { %414 = vmatpush3.msra.mxu0 %v30_v2  ;;  %423 = vmatpush3.msra.mxu1 %v160_v6  ;;  %v151_v15 = vld [vmem:[#allocation2 + $0x40] sm:$0xff]  ;;  %v150_v16 = vld [vmem:[#allocation2 + $0x38] sm:$0xff]  ;;  %v149_v17 = vld [vmem:[#allocation2 + $0x30] sm:$0xff] }
  0x13   :  { %415 = vmatprep.subr.mxu0 %v524_v0  ;;  %424 = vmatprep.subr.mxu1 %v524_v0  ;;  %v148_v18 = vld [vmem:[#allocation2 + $0x28] sm:$0xff]  ;;  %v147_v19 = vld [vmem:[#allocation2 + $0x20] sm:$0xff]  ;;  %v146_v20 = vld [vmem:[#allocation2 + $0x18] sm:$0xff] }
  0x14   :  { %416 = vmatpush3.msra.mxu0 %v29_v3  ;;  %425 = vmatpush3.msra.mxu1 %v159_v7  ;;  %v369_v21 = vld [vmem:[%s625_s2] ss:$0 sm:$0xff]  ;;  %v33_v46 = vld [vmem:[%s625_s2 + $0x1] sm:$0x1]  ;;  %v34_v50 = vld [vmem:[%s625_s2 + $0x2] sm:$0x1] }
  0x15   :  { %418 = vmatmul.mubr.msk.f32.vlgmr.msra.gmra.mxu0 %vm39_vm1, %v28_v4  ;;  %455 = vmatprep.subr.mxu0 %v524_v0  ;;  %v287_v57 = vld [vmem:[#allocation2 + $0x110] sm:$0xff]  ;;  %v286_v58 = vld [vmem:[#allocation2 + $0x108] sm:$0xff]  ;;  %v285_v59 = vld [vmem:[#allocation2 + $0x100] sm:$0xff] }
  0x16   :  { %487 = vmatprep.mubr.msk.f32.mxu0 %vm525_vm0, %v524_v0  ;;  %426 = vmatprep.subr.mxu1 %v524_v0  ;;  %v284_v60 = vld [vmem:[#allocation2 + $0xf8] sm:$0xff]  ;;  %v283_v61 = vld [vmem:[#allocation2 + $0xf0] sm:$0xff]  ;;  %v282_v62 = vld [vmem:[#allocation2 + $0xe8] sm:$0xff] }
  0x17   :  { %427 = vmatpush3.msra.mxu1 %v158_v8  ;;  %456 = vmatpush3.msra.mxu0 %v287_v57  ;;  %v281_v63 = vld [vmem:[#allocation2 + $0xe0] sm:$0xff]  ;;  %v280_v1 = vld [vmem:[#allocation2 + $0xd8] sm:$0xff]  ;;  %v279_v2 = vld [vmem:[#allocation2 + $0xd0] sm:$0xff] }
  0x18   :  { %428 = vmatprep.subr.mxu1 %v524_v0  ;;  %457 = vmatprep.subr.mxu0 %v524_v0  ;;  %v278_v3 = vld [vmem:[#allocation2 + $0xc8] sm:$0xff]  ;;  %v277_v4 = vld [vmem:[#allocation2 + $0xc0] sm:$0xff]  ;;  %v276_v5 = vld [vmem:[#allocation2 + $0xb8] sm:$0xff] }
  0x19   :  { %429 = vmatpush3.msra.mxu1 %v157_v9  ;;  %458 = vmatpush3.msra.mxu0 %v286_v58  ;;  %v275_v6 = vld [vmem:[#allocation2 + $0xb0] sm:$0xff]  ;;  %v274_v7 = vld [vmem:[#allocation2 + $0xa8] sm:$0xff]  ;;  %v273_v8 = vld [vmem:[#allocation2 + $0xa0] sm:$0xff] }
  0x1a   :  { %430 = vmatprep.subr.mxu1 %v524_v0  ;;  %459 = vmatprep.subr.mxu0 %v524_v0  ;;  %v272_v9 = vld [vmem:[#allocation2 + $0x98] sm:$0xff] }
  0x1b   :  { %431 = vmatpush3.msra.mxu1 %v156_v10  ;;  %460 = vmatpush3.msra.mxu0 %v285_v59  ;;  %v371_v10 = vld [vmem:[%s625_s2 + $0x3] ss:$0 sm:$0xff] }
  0x1c   :  { %432 = vmatprep.subr.mxu1 %v524_v0  ;;  %461 = vmatprep.subr.mxu0 %v524_v0 }
  0x1d   :  { %433 = vmatpush3.msra.mxu1 %v155_v11  ;;  %462 = vmatpush3.msra.mxu0 %v284_v60 }
  0x1e   :  { %434 = vmatprep.subr.mxu1 %v524_v0  ;;  %463 = vmatprep.subr.mxu0 %v524_v0 }
  0x1f   :  { %435 = vmatpush3.msra.mxu1 %v154_v12  ;;  %464 = vmatpush3.msra.mxu0 %v283_v61 }
  0x20   :  { %436 = vmatprep.subr.mxu1 %v524_v0  ;;  %465 = vmatprep.subr.mxu0 %v524_v0 }
  0x21   :  { %437 = vmatpush3.msra.mxu1 %v153_v13  ;;  %466 = vmatpush3.msra.mxu0 %v282_v62 }
  0x22   :  { %438 = vmatprep.subr.mxu1 %v524_v0  ;;  %467 = vmatprep.subr.mxu0 %v524_v0 }
  0x23   :  { %439 = vmatpush3.msra.mxu1 %v152_v14  ;;  %468 = vmatpush3.msra.mxu0 %v281_v63 }
  0x24   :  { %440 = vmatprep.subr.mxu1 %v524_v0  ;;  %469 = vmatprep.subr.mxu0 %v524_v0 }
  0x25   :  { %441 = vmatpush3.msra.mxu1 %v151_v15  ;;  %470 = vmatpush3.msra.mxu0 %v280_v1 }
  0x26   :  { %442 = vmatprep.subr.mxu1 %v524_v0  ;;  %471 = vmatprep.subr.mxu0 %v524_v0 }
  0x27   :  { %443 = vmatpush3.msra.mxu1 %v150_v16  ;;  %472 = vmatpush3.msra.mxu0 %v279_v2 }
  0x28   :  { %444 = vmatprep.subr.mxu1 %v524_v0  ;;  %473 = vmatprep.subr.mxu0 %v524_v0 }
  0x29   :  { %445 = vmatpush3.msra.mxu1 %v149_v17  ;;  %474 = vmatpush3.msra.mxu0 %v278_v3 }
  0x2a   :  { %446 = vmatprep.subr.mxu1 %v524_v0  ;;  %475 = vmatprep.subr.mxu0 %v524_v0 }
  0x2b   :  { %447 = vmatpush3.msra.mxu1 %v148_v18  ;;  %476 = vmatpush3.msra.mxu0 %v277_v4 }
  0x2c   :  { %448 = vmatprep.subr.mxu1 %v524_v0  ;;  %477 = vmatprep.subr.mxu0 %v524_v0 }
  0x2d   :  { %449 = vmatpush3.msra.mxu1 %v147_v19  ;;  %478 = vmatpush3.msra.mxu0 %v276_v5 }
  0x2e   :  { %450 = vmatprep.subr.mxu1 %v524_v0  ;;  %479 = vmatprep.subr.mxu0 %v524_v0 }
  0x2f   :  { %451 = vmatpush3.msra.mxu1 %v146_v20  ;;  %480 = vmatpush3.msra.mxu0 %v275_v6 }
  0x30   :  { %481 = vmatprep.subr.mxu0 %v524_v0 }
  0x31   :  { %482 = vmatpush3.msra.mxu0 %v274_v7 }
  0x32   :  { %483 = vmatprep.subr.mxu0 %v524_v0 }
  0x33   :  { %484 = vmatpush3.msra.mxu0 %v273_v8 }
  0x34   :  { %485 = vmatprep.subr.mxu0 %v524_v0 }
  0x35   :  { %486 = vmatpush3.msra.mxu0 %v272_v9 }
  0xd5   :  { %v109_v22 = vpop.f32.mrf.mxu0 }
  0xd6   :  { %v110_v23 = vadd.f32 %v369_v21, %v109_v22 }
  0xd7   :  { %v419_v24 = vpop.f32.mrf.mxu0 }
  0xd8   :  { %v113_v25 = vmax.f32 %v110_v23, 0.0 }
  0xda   :  { %v114_v26 = vrot.slane %v113_v25, 4  ;;  %v121_v27 = vmul.f32 %v113_v25, %v113_v25 }
  0xdc   :  { %v115_v28 = vadd.f32 %v114_v26, %v113_v25  ;;  %v122_v29 = vrot.slane %v121_v27, 4 }
  0xde   :  { %v116_v30 = vrot.slane %v115_v28, 2  ;;  %v123_v31 = vadd.f32 %v122_v29, %v121_v27 }
  0xe0   :  { %v117_v32 = vadd.f32 %v116_v30, %v115_v28  ;;  %v124_v33 = vrot.slane %v123_v31, 2 }
  0xe2   :  { %v118_v34 = vrot.slane %v117_v32, 1  ;;  %v125_v35 = vadd.f32 %v124_v33, %v123_v31 }
  0xe4   :  { %v126_v36 = vrot.slane %v125_v35, 1  ;;  %v119_v37 = vadd.f32 %v118_v34, %v117_v32  ;;  %v163_v32 = vld [vmem:[%s625_s2 + $0x4] sm:$0x1] }
  0xe6   :  { %v127_v38 = vadd.f32 %v126_v36, %v125_v35  ;;  %v120_v39 = vmul.f32 0.125, %v119_v37  ;;  %v164_v35 = vld [vmem:[%s625_s2 + $0x5] sm:$0x1] }
  0xe8   :  { %v128_v40 = vmul.f32 0.125, %v127_v38  ;;  %v129_v41 = vmul.f32 %v120_v39, %v120_v39 }
  0xea   :  { %v130_v42 = vsub.f32 %v128_v40, %v129_v41 }
  0xec   :  { %v131_v43 = vadd.f32 1e-05, %v130_v42  ;;  %v372_v42 = vld [vmem:[%s625_s2 + $0x6] ss:$0 sm:$0xff] }
  0xee   :  { %495 = vrsqrt.f32 %v131_v43 }
  0xfb   :  { %v496_v48 = vpop.eup %495 }
  0xfc   :  { %v133_v49 = vmul.f32 %v496_v48, %v33_v46 }
  0xfe   :  { %v134_v51 = vmul.f32 %v133_v49, %v120_v39  ;;  %v139_v52 = vrot.slane %v133_v49, %v584_v47 }
 0x100   :  { %v135_v53 = vsub.f32 %v34_v50, %v134_v51  ;;  %v140_v54 = vmul.f32 %v139_v52, %v113_v25 }
 0x102   :  { %v144_v55 = vrot.slane %v135_v53, %v584_v47 }
 0x104   :  { %v145_v56 = vadd.f32 %v144_v55, %v140_v54 }
 0x106   :  { %453 = vmatmul.mubr.f32.vlgmr.msra.gmra.mxu1 %v145_v56 }
 0x1c6   :  { %v235_v11 = vpop.f32.mrf.mxu1 }
 0x1c7   :  { %v236_v12 = vadd.f32 %v371_v10, %v235_v11 }
 0x1c8   :  { %v454_v13 = vpop.f32.mrf.mxu1 }
 0x1c9   :  { %v239_v14 = vmax.f32 %v236_v12, 0.0 }
 0x1cb   :  { %v240_v15 = vrot.slane %v239_v14, 4  ;;  %v247_v16 = vmul.f32 %v239_v14, %v239_v14 }
 0x1cd   :  { %v241_v17 = vadd.f32 %v240_v15, %v239_v14  ;;  %v248_v18 = vrot.slane %v247_v16, 4 }
 0x1cf   :  { %v242_v19 = vrot.slane %v241_v17, 2  ;;  %v249_v20 = vadd.f32 %v248_v18, %v247_v16 }
 0x1d1   :  { %v243_v21 = vadd.f32 %v242_v19, %v241_v17  ;;  %v250_v22 = vrot.slane %v249_v20, 2 }
 0x1d3   :  { %v244_v23 = vrot.slane %v243_v21, 1  ;;  %v251_v24 = vadd.f32 %v250_v22, %v249_v20 }
 0x1d5   :  { %v245_v0 = vadd.f32 %v244_v23, %v243_v21  ;;  %v252_v25 = vrot.slane %v251_v24, 1 }
 0x1d7   :  { %v246_v26 = vmul.f32 0.125, %v245_v0  ;;  %v253_v27 = vadd.f32 %v252_v25, %v251_v24 }
 0x1d9   :  { %v254_v28 = vmul.f32 0.125, %v253_v27  ;;  %v255_v29 = vmul.f32 %v246_v26, %v246_v26 }
 0x1db   :  { %v256_v30 = vsub.f32 %v254_v28, %v255_v29 }
 0x1dd   :  { %v257_v31 = vadd.f32 1e-05, %v256_v30 }
 0x1df   :  { %497 = vrsqrt.f32 %v257_v31 }
 0x1ec   :  { %v498_v33 = vpop.eup %497 }
 0x1ed   :  { %v259_v34 = vmul.f32 %v498_v33, %v163_v32 }
 0x1ef   :  { %v265_v36 = vrot.slane %v259_v34, %v584_v47  ;;  %v260_v37 = vmul.f32 %v259_v34, %v246_v26 }
 0x1f1   :  { %v261_v38 = vsub.f32 %v164_v35, %v260_v37  ;;  %v266_v39 = vmul.f32 %v265_v36, %v239_v14 }
 0x1f3   :  { %v270_v40 = vrot.slane %v261_v38, %v584_v47 }
 0x1f5   :  { %v271_v41 = vadd.f32 %v270_v40, %v266_v39 }
 0x1f7   :  { %488 = vmatmul.mubr.f32.vlgmr.msra.gmra.mxu0 %v271_v41 }
 0x2b7   :  { %v359_v43 = vpop.f32.mrf.mxu0 }
 0x2b8   :  { %v360_v44 = vadd.f32 %v372_v42, %v359_v43 }
 0x2b9   :  { %v489_v45 = vpop.f32.mrf.mxu0 }
 0x2ba   :  { %363 = vst [vmem:[%s626_s3] sm:$0xff] %v360_v44 }
 0x2bb   :  { %368 = vsyncpa [#allocation3], 1 }

</bundles_post_ra>
